<compile_context>
chip_gen: v7x
topology: tpu7x:2x2x1
jax: 0.10.0
libtpu: 0.0.40
codegen_flags: <defaults>
</compile_context>

<pallas_src>
import functools

import jax
import jax.numpy as jnp
from jax import lax
from jax.experimental import pallas as pl
from jax.experimental.pallas import tpu as pltpu


def _focal_loss_kernel(x_ref, t_ref, out_ref, tot_ref, cnt_ref, *,
                       gamma, ignore_index):
    i = pl.program_id(1)                             # inner (row-tile) axis

    @pl.when(i == 0)
    def _():
        tot_ref[...] = jnp.zeros_like(tot_ref)
        cnt_ref[...] = jnp.zeros_like(cnt_ref)

    x = x_ref[...].astype(jnp.float32)               # [TN, C]
    t = t_ref[...]                                   # [TN, 1] int32
    tn, c = x.shape

    # log-softmax pieces: the only full-width transcendental is this exp.
    m = jnp.max(x, axis=1, keepdims=True)            # [TN, 1]
    shifted = x - m                                  # [TN, C]
    e = jnp.exp(shifted)                             # [TN, C]
    lse = jnp.log(jnp.sum(e, axis=1, keepdims=True))  # [TN, 1]

    # Gather shifted[r, t[r]] via one-hot select (no dynamic gather on TPU),
    # THEN do the focal modulation on [TN, 1] only.
    col = lax.broadcasted_iota(jnp.int32, (tn, c), 1)
    onehot = col == t                                 # broadcast of [TN, 1]
    picked_shifted = jnp.sum(jnp.where(onehot, shifted, 0.0),
                             axis=1, keepdims=True)   # [TN, 1]

    log_pt_t = picked_shifted - lse                   # [TN, 1]
    pt_t = jnp.exp(log_pt_t)                          # [TN, 1]
    one_minus = 1.0 - pt_t
    if float(gamma) == int(gamma) and int(gamma) >= 0:
        # Integer gamma: explicit multiplies instead of a transcendental pow.
        mod = jnp.ones_like(one_minus)
        for _ in range(int(gamma)):
            mod = mod * one_minus
    else:
        # Fractional gamma: pow lowers to exp(g*log(x)); guard x<=0 explicitly.
        safe = jnp.maximum(one_minus, jnp.finfo(jnp.float32).tiny)
        mod = jnp.where(one_minus <= 0.0, 0.0, safe ** float(gamma))
    focal_t = mod * log_pt_t                          # [TN, 1]

    # nll_loss with weight=None, reduction='mean', ignore_index.
    valid = t != ignore_index                         # [TN, 1]
    per_sample = jnp.where(valid, -focal_t, 0.0)      # [TN, 1]

    # Element-wise running accumulation (VPU only, no per-step XLU reduce).
    tot_ref[...] += per_sample
    cnt_ref[...] += valid.astype(jnp.float32)

    @pl.when(i == pl.num_programs(1) - 1)
    def _():
        # One cross-sublane reduce per partition; pack scalars into an
        # (8,128)-aligned partial block: total -> lane 0, count -> lane 1.
        total = jnp.sum(tot_ref[...])
        count = jnp.sum(cnt_ref[...])
        row = lax.broadcasted_iota(jnp.int32, (8, 128), 0)
        lane = lax.broadcasted_iota(jnp.int32, (8, 128), 1)
        out_ref[...] = jnp.where(
            (row == 0) & (lane == 0), total,
            jnp.where((row == 0) & (lane == 1), count, 0.0))


def focal_loss(inputs, target, *, gamma=2, ignore_index=-100,
               tile_rows=None, num_partitions=2):
    """inputs: [N, C] (any float dtype), target: [N, 1] or [N] integer."""
    n, c = inputs.shape
    target = jnp.asarray(target).reshape(n, 1).astype(jnp.int32)

    itemsize = jnp.dtype(inputs.dtype).itemsize
    c_pad = ((c + 127) // 128) * 128                  # lane-padded class dim

    # Generation-aware VMEM limit: ~96 MiB on v5e/v6e (128 MiB physical),
    # ~48 MiB on v7x (64 MiB physical), conservative 48 MiB fallback.
    try:
        vmem_cap = int(pltpu.get_tpu_info().vmem_capacity_bytes)
    except Exception:
        vmem_cap = 64 * 1024 * 1024
    vmem_limit = max(32 * 1024 * 1024,
                     min(100 * 1024 * 1024, vmem_cap * 3 // 4))

    if tile_rows is None:
        # Per-row VMEM model (all lane-padded):
        #   2x native x block (double-buffered input)
        # + ~3 f32 [TN,C] temporaries (upcast/shifted/exp + int32 iota)
        # + ~12 [TN,1] f32 columns (keepdims temps + 2 accumulator scratches),
        #   each padded to 128 lanes.
        per_row = (2 * c_pad * itemsize) + (3 * c_pad * 4) + (12 * 128 * 4)
        budget = int(vmem_limit * 0.6)                # headroom for out/misc
        tile_rows = max(8, (budget // per_row) // 8 * 8)
    tn = max(8, (int(tile_rows) // 8) * 8)
    # Never tile past the data: one tile per partition suffices for small N.
    rows_per_part_min = ((pl.cdiv(n, num_partitions) + 7) // 8) * 8
    tn = min(tn, rows_per_part_min)

    tiles_per_part = pl.cdiv(n, num_partitions * tn)
    n_pad = num_partitions * tiles_per_part * tn
    if n_pad != n:
        pad = n_pad - n
        inputs = jnp.pad(inputs, ((0, pad), (0, 0)))
        target = jnp.pad(target, ((0, pad), (0, 0)),
                         constant_values=ignore_index)  # padded rows ignored

    kernel = functools.partial(_focal_loss_kernel, gamma=gamma,
                               ignore_index=ignore_index)

    def row_map(p, i):
        return (p * tiles_per_part + i, 0)

    out = pl.pallas_call(
        kernel,
        out_shape=jax.ShapeDtypeStruct((num_partitions * 8, 128), jnp.float32),
        grid_spec=pltpu.PrefetchScalarGridSpec(
            num_scalar_prefetch=0,
            grid=(num_partitions, tiles_per_part),
            in_specs=[
                pl.BlockSpec((tn, c), row_map),
                pl.BlockSpec((tn, 1), row_map),
            ],
            out_specs=pl.BlockSpec((8, 128), lambda p, i: (p, 0)),
            scratch_shapes=[
                pltpu.VMEM((tn, 1), jnp.float32),   # running per-row totals
                pltpu.VMEM((tn, 1), jnp.float32),   # running per-row counts
            ],
        ),
        compiler_params=pltpu.CompilerParams(
            # Leading axis: per-core partials (2 TCs on v7x); inner axis:
            # sequential running reduction over row tiles.
            dimension_semantics=("parallel", "arbitrary"),
            vmem_limit_bytes=vmem_limit,
        ),
    )(inputs, target)   # inputs streamed in native dtype; kernel upcasts

    # Combine per-partition partials; count==0 (all ignored) yields NaN,
    # matching PyTorch nll_loss with reduction='mean'.
    total = jnp.sum(out[:, 0])
    count = jnp.sum(out[:, 1])
    # TODO(synk): per-class `weight` and reduction='none'/'sum' not implemented
    # (module defaults are weight=None, reduction='mean').
    return total / count


def _focal_loss_ref(inputs, target, *, gamma=2, ignore_index=-100):
    """Pure-JAX reference for validation."""
    t = jnp.asarray(target).reshape(-1).astype(jnp.int32)
    log_pt = jax.nn.log_softmax(inputs.astype(jnp.float32), axis=1)
    pt = jnp.exp(log_pt)
    focal = ((1.0 - pt) ** gamma) * log_pt
    picked = jnp.take_along_axis(focal, jnp.clip(t, 0)[:, None], axis=1)[:, 0]
    valid = (t != ignore_index)
    per_sample = jnp.where(valid, -picked, 0.0)
    return jnp.sum(per_sample) / jnp.sum(valid.astype(jnp.float32))


if __name__ == "__main__":
    import numpy as np

    key = jax.random.PRNGKey(0)
    k1, k2, k3, k4 = jax.random.split(key, 4)

    # Small, module-consistent shape: N=8 samples, C=16 classes, one ignored row.
    N, C = 8, 16
    x = jax.random.normal(k1, (N, C), dtype=jnp.float32)
    tgt = jax.random.randint(k2, (N, 1), 0, C, dtype=jnp.int32)
    tgt = tgt.at[3, 0].set(-100)

    loss = focal_loss(x, tgt, gamma=2, ignore_index=-100)
    jax.block_until_ready(loss)
    np.testing.assert_allclose(np.asarray(loss),
                               np.asarray(_focal_loss_ref(x, tgt)),
                               rtol=1e-5, atol=1e-5)

    # Multi-tile / multi-partition path: non-multiple-of-8 N (row padding),
    # bf16 streaming, forced TN=8 so both grid axes have >1 step.
    N2, C2 = 20, 32
    x2 = jax.random.normal(k3, (N2, C2), dtype=jnp.float32).astype(jnp.bfloat16)
    tgt2 = jax.random.randint(k4, (N2, 1), 0, C2, dtype=jnp.int32)
    loss2 = focal_loss(x2, tgt2, gamma=2, ignore_index=-100, tile_rows=8)
    jax.block_until_ready(loss2)
    np.testing.assert_allclose(np.asarray(loss2),
                               np.asarray(_focal_loss_ref(x2, tgt2)),
                               rtol=2e-2, atol=2e-2)

    print("KERNEL_OK")
</pallas_src>

<mosaic_0001>
module attributes {stable_mosaic.version = 11 : i64} {
  func.func @_focal_loss_kernel(%arg0: i32, %arg1: i32, %arg2: memref<8x16xf32, #tpu.memory_space<vmem>>, %arg3: memref<8x1xi32, #tpu.memory_space<vmem>>, %arg4: memref<8x128xf32, #tpu.memory_space<vmem>>, %arg5: memref<8x1xf32, #tpu.memory_space<vmem>>, %arg6: memref<8x1xf32, #tpu.memory_space<vmem>>) attributes {dimension_semantics = [#tpu.dimension_semantics<parallel>, #tpu.dimension_semantics<arbitrary>], iteration_bounds = array<i64: 2, 1>, scalar_prefetch = 0 : i64, scratch_operands = 2 : i64, tpu.core_type = #tpu.core_type<tc>, window_params = [{transform_indices = @transform_0, window_bounds = array<i64: 8, 16>}, {transform_indices = @transform_1, window_bounds = array<i64: 8, 1>}, {transform_indices = @transform_2, window_bounds = array<i64: 8, 128>}]} {
    %c0_i32 = arith.constant 0 : i32
    %0 = arith.cmpi eq, %arg1, %c0_i32 : i32
    %1 = arith.extui %0 : i1 to i32
    %c0_i32_0 = arith.constant 0 : i32
    %2 = arith.cmpi ne, %1, %c0_i32_0 : i32
    scf.if %2 {
      %cst_21 = arith.constant 0.000000e+00 : f32
      %45 = vector.broadcast %cst_21 : f32 to vector<8x1xf32>
      %c0_22 = arith.constant 0 : index
      %c0_23 = arith.constant 0 : index
      %46 = vector.load %arg5[%c0_22, %c0_23] : memref<8x1xf32, #tpu.memory_space<vmem>>, vector<8x1xf32>
      tpu.vector_store %arg5[%c0_22, %c0_23], %45 {strides = array<i32>} : memref<8x1xf32, #tpu.memory_space<vmem>>, vector<8x1xf32>,
      %cst_24 = arith.constant 0.000000e+00 : f32
      %47 = vector.broadcast %cst_24 : f32 to vector<8x1xf32>
      %c0_25 = arith.constant 0 : index
      %c0_26 = arith.constant 0 : index
      %48 = vector.load %arg6[%c0_25, %c0_26] : memref<8x1xf32, #tpu.memory_space<vmem>>, vector<8x1xf32>
      tpu.vector_store %arg6[%c0_25, %c0_26], %47 {strides = array<i32>} : memref<8x1xf32, #tpu.memory_space<vmem>>, vector<8x1xf32>,
    } else {
    }
    %c0 = arith.constant 0 : index
    %c0_1 = arith.constant 0 : index
    %3 = vector.load %arg2[%c0, %c0_1] : memref<8x16xf32, #tpu.memory_space<vmem>>, vector<8x16xf32>
    %c0_2 = arith.constant 0 : index
    %c0_3 = arith.constant 0 : index
    %4 = vector.load %arg3[%c0_2, %c0_3] : memref<8x1xi32, #tpu.memory_space<vmem>>, vector<8x1xi32>
    %cst = arith.constant dense<0xFF800000> : vector<8xf32>
    %5 = vector.multi_reduction <maximumf>, %3, %cst [1] : vector<8x16xf32> to vector<8xf32>
    %6 = vector.shape_cast %5 : vector<8xf32> to vector<8x1xf32>
    %7 = vector.broadcast %6 : vector<8x1xf32> to vector<8x16xf32>
    %8 = arith.subf %3, %7 : vector<8x16xf32>
    %9 = math.exp %8 : vector<8x16xf32>
    %cst_4 = arith.constant dense<0.000000e+00> : vector<8xf32>
    %10 = vector.multi_reduction <add>, %9, %cst_4 [1] : vector<8x16xf32> to vector<8xf32>
    %11 = vector.shape_cast %10 : vector<8xf32> to vector<8x1xf32>
    %12 = math.log %11 : vector<8x1xf32>
    %13 = tpu.iota {dimensions = array<i32: 1>} : vector<8x16xi32>
    %14 = vector.broadcast %4 : vector<8x1xi32> to vector<8x16xi32>
    %15 = arith.cmpi eq, %13, %14 : vector<8x16xi32>
    %cst_5 = arith.constant 0.000000e+00 : f32
    %16 = vector.broadcast %cst_5 : f32 to vector<8x16xf32>
    %17 = arith.select %15, %8, %16 : vector<8x16xi1>, vector<8x16xf32>
    %cst_6 = arith.constant dense<0.000000e+00> : vector<8xf32>
    %18 = vector.multi_reduction <add>, %17, %cst_6 [1] : vector<8x16xf32> to vector<8xf32>
    %19 = vector.shape_cast %18 : vector<8xf32> to vector<8x1xf32>
    %20 = arith.subf %19, %12 : vector<8x1xf32>
    %21 = math.exp %20 : vector<8x1xf32>
    %cst_7 = arith.constant 1.000000e+00 : f32
    %22 = vector.broadcast %cst_7 : f32 to vector<8x1xf32>
    %23 = arith.subf %22, %21 : vector<8x1xf32>
    %cst_8 = arith.constant 1.000000e+00 : f32
    %24 = vector.broadcast %cst_8 : f32 to vector<8x1xf32>
    %25 = arith.mulf %24, %23 : vector<8x1xf32>
    %26 = arith.mulf %25, %23 : vector<8x1xf32>
    %27 = arith.mulf %26, %20 : vector<8x1xf32>
    %c-100_i32 = arith.constant -100 : i32
    %28 = vector.broadcast %c-100_i32 : i32 to vector<8x1xi32>
    %29 = arith.cmpi ne, %4, %28 : vector<8x1xi32>
    %cst_9 = arith.constant 0.000000e+00 : f32
    %30 = vector.broadcast %cst_9 : f32 to vector<8x1xf32>
    %31 = arith.subf %30, %27 : vector<8x1xf32>
    %cst_10 = arith.constant 0.000000e+00 : f32
    %32 = vector.broadcast %cst_10 : f32 to vector<8x1xf32>
    %33 = arith.select %29, %31, %32 : vector<8x1xi1>, vector<8x1xf32>
    %c0_11 = arith.constant 0 : index
    %c0_12 = arith.constant 0 : index
    %34 = vector.load %arg5[%c0_11, %c0_12] : memref<8x1xf32, #tpu.memory_space<vmem>>, vector<8x1xf32>
    %35 = arith.addf %34, %33 : vector<8x1xf32>
    %c0_13 = arith.constant 0 : index
    %c0_14 = arith.constant 0 : index
    %36 = vector.load %arg5[%c0_13, %c0_14] : memref<8x1xf32, #tpu.memory_space<vmem>>, vector<8x1xf32>
    tpu.vector_store %arg5[%c0_13, %c0_14], %35 {strides = array<i32>} : memref<8x1xf32, #tpu.memory_space<vmem>>, vector<8x1xf32>,
    %c0_15 = arith.constant 0 : index
    %c0_16 = arith.constant 0 : index
    %37 = vector.load %arg6[%c0_15, %c0_16] : memref<8x1xf32, #tpu.memory_space<vmem>>, vector<8x1xf32>
    %38 = arith.extui %29 : vector<8x1xi1> to vector<8x1xi32>
    %39 = arith.sitofp %38 : vector<8x1xi32> to vector<8x1xf32>
    %40 = arith.addf %37, %39 : vector<8x1xf32>
    %c0_17 = arith.constant 0 : index
    %c0_18 = arith.constant 0 : index
    %41 = vector.load %arg6[%c0_17, %c0_18] : memref<8x1xf32, #tpu.memory_space<vmem>>, vector<8x1xf32>
    tpu.vector_store %arg6[%c0_17, %c0_18], %40 {strides = array<i32>} : memref<8x1xf32, #tpu.memory_space<vmem>>, vector<8x1xf32>,
    %c0_i32_19 = arith.constant 0 : i32
    %42 = arith.cmpi eq, %arg1, %c0_i32_19 : i32
    %43 = arith.extui %42 : i1 to i32
    %c0_i32_20 = arith.constant 0 : i32
    %44 = arith.cmpi ne, %43, %c0_i32_20 : i32
    scf.if %44 {
      %c0_21 = arith.constant 0 : index
      %c0_22 = arith.constant 0 : index
      %45 = vector.load %arg5[%c0_21, %c0_22] : memref<8x1xf32, #tpu.memory_space<vmem>>, vector<8x1xf32>
      %46 = vector.shape_cast %45 : vector<8x1xf32> to vector<1x8x1xf32>
      %cst_23 = arith.constant dense<0.000000e+00> : vector<1xf32>
      %47 = vector.multi_reduction <add>, %46, %cst_23 [1, 2] : vector<1x8x1xf32> to vector<1xf32>
      %48 = vector.shape_cast %47 : vector<1xf32> to vector<1x1x1xf32>
      %49 = vector.extract %48[0, 0, 0] : f32 from vector<1x1x1xf32>
      %c0_24 = arith.constant 0 : index
      %c0_25 = arith.constant 0 : index
      %50 = vector.load %arg6[%c0_24, %c0_25] : memref<8x1xf32, #tpu.memory_space<vmem>>, vector<8x1xf32>
      %51 = vector.shape_cast %50 : vector<8x1xf32> to vector<1x8x1xf32>
      %cst_26 = arith.constant dense<0.000000e+00> : vector<1xf32>
      %52 = vector.multi_reduction <add>, %51, %cst_26 [1, 2] : vector<1x8x1xf32> to vector<1xf32>
      %53 = vector.shape_cast %52 : vector<1xf32> to vector<1x1x1xf32>
      %54 = vector.extract %53[0, 0, 0] : f32 from vector<1x1x1xf32>
      %55 = tpu.iota {dimensions = array<i32: 0>} : vector<8x128xi32>
      %56 = tpu.iota {dimensions = array<i32: 1>} : vector<8x128xi32>
      %c0_i32_27 = arith.constant 0 : i32
      %57 = vector.broadcast %c0_i32_27 : i32 to vector<8x128xi32>
      %58 = arith.cmpi eq, %55, %57 : vector<8x128xi32>
      %c0_i32_28 = arith.constant 0 : i32
      %59 = vector.broadcast %c0_i32_28 : i32 to vector<8x128xi32>
      %60 = arith.cmpi eq, %56, %59 : vector<8x128xi32>
      %61 = arith.andi %58, %60 : vector<8x128xi1>
      %c0_i32_29 = arith.constant 0 : i32
      %62 = vector.broadcast %c0_i32_29 : i32 to vector<8x128xi32>
      %63 = arith.cmpi eq, %55, %62 : vector<8x128xi32>
      %c1_i32 = arith.constant 1 : i32
      %64 = vector.broadcast %c1_i32 : i32 to vector<8x128xi32>
      %65 = arith.cmpi eq, %56, %64 : vector<8x128xi32>
      %66 = arith.andi %63, %65 : vector<8x128xi1>
      %cst_30 = arith.constant 0.000000e+00 : f32
      %67 = vector.broadcast %54 : f32 to vector<8x128xf32>
      %68 = vector.broadcast %cst_30 : f32 to vector<8x128xf32>
      %69 = arith.select %66, %67, %68 : vector<8x128xi1>, vector<8x128xf32>
      %70 = vector.broadcast %49 : f32 to vector<8x128xf32>
      %71 = arith.select %61, %70, %69 : vector<8x128xi1>, vector<8x128xf32>
      %c0_31 = arith.constant 0 : index
      %c0_32 = arith.constant 0 : index
      %72 = vector.load %arg4[%c0_31, %c0_32] : memref<8x128xf32, #tpu.memory_space<vmem>>, vector<8x128xf32>
      tpu.vector_store %arg4[%c0_31, %c0_32], %71 {strides = array<i32>} : memref<8x128xf32, #tpu.memory_space<vmem>>, vector<8x128xf32>,
    } else {
    }
    return
  }
  func.func @transform_0(%arg0: i32, %arg1: i32) -> (i32, i32) {
    %c1_i32 = arith.constant 1 : i32
    %0 = arith.muli %arg0, %c1_i32 : i32
    %1 = arith.addi %0, %arg1 : i32
    %c0_i32 = arith.constant 0 : i32
    %c0_i32_0 = arith.constant 0 : i32
    return %1, %c0_i32 : i32, i32
  }
  func.func @transform_1(%arg0: i32, %arg1: i32) -> (i32, i32) {
    %c1_i32 = arith.constant 1 : i32
    %0 = arith.muli %arg0, %c1_i32 : i32
    %1 = arith.addi %0, %arg1 : i32
    %c0_i32 = arith.constant 0 : i32
    %c0_i32_0 = arith.constant 0 : i32
    return %1, %c0_i32 : i32, i32
  }
  func.func @transform_2(%arg0: i32, %arg1: i32) -> (i32, i32) {
    %c0_i32 = arith.constant 0 : i32
    %c0_i32_0 = arith.constant 0 : i32
    return %arg0, %c0_i32 : i32, i32
  }
}

</mosaic_0001>

<bundles_post_ra>
// kernel: tpu_custom_call.1
= control target key start
LH: loop header
LB: loop body
LE: loop exit
PB: predicated region body
PF: predicated region fallthrough
CT: control target
= control target key end

     0   :  { %7 = vsyncpa [#allocation5], 0  ;;  %s666_s0 = inlined_call_operand.vmem [shape: f32[16,16], index: 0, kind: input, shape index: {}]   ;;  %s667_s1 = inlined_call_operand.vmem [shape: s32[16,1], index: 1, kind: input, shape index: {}]   ;;  %s668_s2 = inlined_call_operand.hbm [shape: f32[16,128], index: 2, kind: output, shape index: {}]  }
   0x1   :  { %9 = vsyncpa [#allocation5 + $0x1], 0  ;;  %s540_s9 = smov 0   ;;  %s542_s10 = smov 0  }
   0x2   :  { %s544_s11 = smov 0   ;;  %s546_s12 = smov 0  }
   0x3   :  { %s548_s13 = smov 0   ;;  %s550_s14 = smov 0  }
   0x4 LB: > { %s361_s15 = sadd.s32 4294967295, %s520_s14   ;;  %s362_s16 = sadd.s32 4294967294, %s520_s14   ;;  %s520_s14 = sphi %s550_s14, %s15_s14   ;;  %s516_s13 = sphi %s548_s13, %s675_s13   ;;  %s512_s12 = sphi %s546_s12, %s674_s12   ;;  %s508_s11 = sphi %s544_s11, %s673_s11   ;;  %s504_s10 = sphi %s542_s10, %s672_s10   ;;  %s500_s9 = sphi %s540_s9, %s671_s9  }
   0x5   : > { %s27_s17 = sadd.s32 1, %s516_s13  ;;  %s90_s18 = sadd.s32 1, %s508_s11 }
   0x6   : > { %p29_p0 = scmp.ge.s32.totalorder %s27_s17, 2  ;;  %p100_p1 = scmp.ne.s32.totalorder %s508_s11, %s504_s10 }
   0x7   : > { %p101_p2 = scmp.eq.s32.totalorder %s361_s15, 1  ;;  %p106_p3 = scmp.ne.s32.totalorder %s504_s10, %s500_s9 }
   0x8   : > { %s677_s17 = smov (%p29_p0, %s27_s17), 0  ;;  %p107_p5 = scmp.eq.s32.totalorder %s362_s16, 1 }
   0x9   : > { %p580_p4 = por %p101_p2, %p100_p1  ;;  %s87_s20 = ssub.s32 %s516_s13, %s677_s17 }
   0xa   : > { %p365_p6 = scmp.ge.s32.totalorder %s520_s14, 1  ;;  %p88_p7 = scmp.eq.s32.totalorder %s87_s20, 0 }
   0xb   : > { %p587_p8 = por %p107_p5, %p106_p3  ;;  %p143_p9 = scmp.lt.s32.totalorder %s520_s14, 3 }
   0xc   : > { %s593_s22 = scalar_select %p88_p7, %s508_s11, %s90_s18  }
   0xd   : > { %p144_p10 = pnand %p365_p6, %p143_p9 }
   0xe   : > { %p171_p11 = scmp.lt.s32.totalorder (!%p144_p10), %s512_s12, 1  ;;  %vm186_vm0 = vcmask (!%p144_p10), 7168   ;;  %v522_v0 = vmov (!%p144_p10), 0   ;;  %v523_v1 = vmov (!%p144_p10), 0.0   ;;  %vm191_vm1 = vcmask (!%p144_p10), 130048   ;;  %s167_s3 = sand.u32 (!%p144_p10), 1, %s504_s10  }
   0xf   : > { %147 = sbr.rel (%p144_p10) target bundleno = 601 (0x259), region = 28  ;;  %435 = vset.pattern.permute.xlu0 (!%p144_p10), %v522_v0  ;;  %187 = vst.msk [vmem:[#allocation2] sm:$0xff] (!%p144_p10), %vm186_vm0, %v523_v1  ;;  %188 = vst.msk [vmem:[#allocation3] sm:$0xff] (!%p144_p10), %vm186_vm0, %v523_v1  ;;  %v203_v11 = vlaneseq (!%p144_p10)  ;;  %s366_s4 = sshll.u32 (!%p144_p10), %s167_s3, 3 }
  0x10   : > { %s371_s5 = sshll.u32 (!%p144_p10), %s512_s12, 7  ;;  %s169_s7 = scalar_lea.vmem (!%p144_p10), [#allocation4], %s366_s4 }
  0x11   : > { %v204_v12 = vand.u32 (!%p144_p10), 127, %v203_v11  ;;  %v257_v50 = vshrl.u32 (!%p144_p10), %v203_v11, 7  ;;  %s282_s8 = sshll.u32 (!%p144_p10), %s169_s7, 4  ;;  %s619_s20 = scalar_lea.hbm (!%p144_p10), %s668_s2, %s371_s5  ;;  %s621_s8 = int_to_ptr.vmem [resolvable:$true] %s282_s8 }
  0x13   : > { %vm258_vm4 = vcmp.eq.s32.totalorder (!%p144_p10), %v257_v50, 0  ;;  %vm261_vm5 = vcmp.eq.s32.totalorder (!%p144_p10), %v204_v12, 1  ;;  %vm259_vm6 = vcmp.eq.s32.totalorder (!%p144_p10), %v204_v12, 0 }
  0x14   : > { %vm262_vm7 = vmand (!%p144_p10), %vm258_vm4, %vm261_vm5 }
  0x15   : > { %vm260_vm8 = vmand (!%p144_p10), %vm258_vm4, %vm259_vm6 }
  0x16   : > { %s172_s23 = scalar_select %p171_p11, %s512_s12, 1  ;;  %v226_v5 = vld [vmem:[#allocation3] sm:$0xff]  ;;  %v222_v28 = vld [vmem:[#allocation2] sm:$0xff] }
  0x17   : > { %s269_s12 = scalar_lea.sflag [#allocation5], %s167_s3 }
  0x18   : > { %s367_s24 = sshll.u32 %s172_s23, 3  ;;  %s442_s23 = scalar_lea.vmem %s621_s8, 128 }
  0x19   : > { %s174_s27 = scalar_lea.vmem %s666_s0, %s367_s24  ;;  %s180_s30 = scalar_lea.vmem %s667_s1, %s367_s24 }
  0x1a   : > { %v189_v2 = vld [vmem:[%s174_s27] sm:$0xff]  ;;  %p443_p12 = scmp.ne.s32.totalorder %s621_s8, %s442_s23  ;;  %s524_s24 = smov [#allocation4]  }
  0x1b   : > { %v190_v3 = vld [vmem:[%s180_s30] sm:$0xff]  ;;  %v192_v4 = vsel %vm191_vm1, %v189_v2, -inf  ;;  %s446_s25 = sshll.u32 %s524_s24, 4  ;;  %s447_s25 = int_to_ptr.vmem [resolvable:$false] %s446_s25 }
  0x1c   : > { %vm219_vm2 = vcmp.ne.s32.totalorder %v190_v3, 4294967196  ;;  %193 = vmax.xlane.f32.xlu0 %v192_v4  ;;  %p444_p13 = pnand %p443_p12, %p580_p4  ;;  %s448_s26 = scalar_lea.vmem %s447_s25, 256 }
  0x1d   : > { %v369_v6 = vsel %vm219_vm2, 1.0, %v523_v1  ;;  %p449_p1 = scmp.lt.s32.totalorder %s621_s8, %s447_s25  ;;  %p450_p2 = scmp.lt.s32.totalorder %s448_s26, %s442_s23 }
  0x1e   : > { %v229_v7 = vadd.f32 %v369_v6, %v226_v5  ;;  %p445_p0 = pneg %p444_p13 }
  0x1f   : > { %p451_p3 = por %p450_p2, %p449_p1 }
  0x20   : > { %230 = vst.msk [vmem:[#allocation3] sm:$0xff] %vm186_vm0, %v229_v7 }
  0x21   : > { %p452_p5 = pnand %p451_p3, %p445_p0 }
  0x27   : > { %v245_v33 = vld [vmem:[#allocation3] sm:$0xff] }
  0x28   : > { %v246_v35 = vsel %vm186_vm0, %v245_v33, 0.0 }
  0x32   : > { %206 = vperm.xlu0 %435, %v190_v3  }
  0xa9   : > { %v194_v8 = vpop.xlane.xlu0 %193 }
  0xaa   : > { %v195_v9 = vsub.f32 %v189_v2, %v194_v8 }
  0xac   : > { %v196_v10 = vmul.f32 1.442695, %v195_v9 }
  0xae   : > { %436 = vpow2.f32 %v196_v10 }
  0xb1   : > { %v207_v13 = vpop.permute.xlu0 %206 }
  0xb2   : > { %vm208_vm3 = vcmp.eq.s32.totalorder %v204_v12, %v207_v13 }
  0xb3   : > { %v209_v16 = vsel %vm208_vm3, %v195_v9, 0.0 }
  0xb4   : > { %v210_v17 = vsel %vm191_vm1, %v209_v16, 0.0 }
  0xb8   : > { %v437_v14 = vpop.eup %436 }
  0xb9   : > { %v198_v15 = vsel %vm191_vm1, %v437_v14, 0.0 }
  0xba   : > { %199 = vadd.xlane.f32.xlu1 %v198_v15 }
  0xbe   : > { %211 = vadd.xlane.f32.xlu1 %v210_v17 }
 0x147   : > { %v200_v18 = vpop.xlane.xlu1 %199 }
 0x148   : > { %438 = vlog2.f32 %v200_v18 }
 0x14b   : > { %v212_v21 = vpop.xlane.xlu1 %211 }
 0x152   : > { %v439_v19 = vpop.eup %438 }
 0x153   : > { %v202_v20 = vmul.f32 0.6931472, %v439_v19 }
 0x155   : > { %v213_v22 = vsub.f32 %v212_v21, %v202_v20 }
 0x157   : > { %v214_v23 = vmul.f32 1.442695, %v213_v22 }
 0x159   : > { %440 = vpow2.f32 %v214_v23 }
 0x163   : > { %v441_v24 = vpop.eup %440 }
 0x164   : > { %v216_v25 = vsub.f32 1.0, %v441_v24 }
 0x166   : > { %v217_v26 = vmul.f32 %v216_v25, %v216_v25 }
 0x168   : > { %v218_v27 = vmul.f32 %v217_v26, %v213_v22 }
 0x16a   : > { %v220_v29 = vsub.f32 0.0, %v218_v27 }
 0x16c   : > { %v221_v30 = vsel %vm219_vm2, %v220_v29, 0.0 }
 0x16d   : > { %v223_v31 = vadd.f32 %v222_v28, %v221_v30 }
 0x16f   : > { %225 = vst.msk [vmem:[#allocation2] sm:$0xff] %vm186_vm0, %v223_v31 }
 0x176   : > { %v234_v32 = vld [vmem:[#allocation2] sm:$0xff] }
 0x177   : > { %v235_v34 = vsel %vm186_vm0, %v234_v32, 0.0 }
 0x178   : > { %236 = vadd.xlane.f32.xlu1 %v235_v34 }
 0x17c   : > { %247 = vadd.xlane.f32.xlu1 %v246_v35 }
 0x205   : > { %v237_v36 = vpop.xlane.xlu1 %236 }
 0x206   : > { %v238_v37 = vrot.slane %v237_v36, 4 }
 0x208   : > { %v239_v38 = vadd.f32 %v238_v37, %v237_v36 }
 0x209   : > { %v248_v39 = vpop.xlane.xlu1 %247 }
 0x20a   : > { %v240_v40 = vrot.slane %v239_v38, 2  ;;  %v249_v41 = vrot.slane %v248_v39, 4 }
 0x20c   : > { %v250_v42 = vadd.f32 %v249_v41, %v248_v39  ;;  %v241_v43 = vadd.f32 %v240_v40, %v239_v38 }
 0x20e   : > { %v251_v44 = vrot.slane %v250_v42, 2  ;;  %v242_v45 = vrot.slane %v241_v43, 1 }
 0x210   : > { %v252_v46 = vadd.f32 %v251_v44, %v250_v42  ;;  %v243_v47 = vadd.f32 %v242_v45, %v241_v43 }
 0x212   : > { %374 = vpush %v243_v47  ;;  %v253_v48 = vrot.slane %v252_v46, 1 }
 0x214   : > { %v254_v49 = vadd.f32 %v253_v48, %v252_v46 }
 0x216   : > { %376 = vpush %v254_v49 }
 0x243   : > { %s375_s6 = spop %374 }
 0x244   : > { %v265_v52 = vstv %s375_s6 }
 0x247   : > { %s377_s15 = spop %376 }
 0x248   : > { %v263_v51 = vstv %s377_s15 }
 0x249   : > { %v264_v53 = vsel %vm262_vm7, %v263_v51, 0.0 }
 0x24a   : > { %v266_v54 = vsel %vm260_vm8, %v265_v52, %v264_v53 }
 0x24b   : > { %267 = vst [vmem:[%s169_s7] sm:$0xff] %v266_v54 }
 0x24c   : > { %455 = shalt.err (!%p452_p5)
}
 0x24d   : > { %s456_s27 = scalar_lea.hbm %s619_s20, 128  ;;  %s460_s30 = scalar_lea.hbm %s668_s2, 256 }
 0x24e   : > { %p457_p6 = scmp.ne.s32.totalorder %s619_s20, %s456_s27  ;;  %p461_p10 = scmp.lt.u32.totalorder %s619_s20, %s668_s2 }
 0x24f   : > { %p462_p11 = scmp.lt.u32.totalorder %s460_s30, %s456_s27  ;;  %p464_p13 = scmp.lt.u32.totalorder %s456_s27, %s619_s20 }
 0x250   : > { %p458_p7 = pnand %p457_p6, %p580_p4 }
 0x251   : > { %p463_p12 = por %p462_p11, %p461_p10 }
 0x252   : > { %p459_p9 = pneg %p458_p7 }
 0x253   : > { %p465_p0 = por %p464_p13, %p463_p12 }
 0x255   : > { %p466_p1 = pnand %p465_p0, %p459_p9 }
 0x257   : > { %469 = shalt.err (!%p466_p1)
}
 0x258   : > { %378 = dma.vmem_to_hbm [thread:$0]  (%p580_p4), %s621_s8, 128, %s619_s20, %s269_s12  }
 0x259 PF: > { %p384_p2 = scmp.ge.s32.totalorder %s520_s14, 2  ;;  %s294_s5 = sand.u32 1, %s500_s9  }
 0x25a   : > { %s295_s6 = scalar_lea.sflag [#allocation5], %s294_s5 }
 0x25b   : > { %p381_p3 = pnand %p384_p2, %p587_p8 }
 0x25d   : > { %495 = dma.done.wait (!%p381_p3), %s295_s6, 128  }
 0x25e   : > { %497 = vsyncadd (!%p381_p3), %s295_s6, 4294967168  ;;  %s15_s14 = sadd.s32 1, %s520_s14   ;;  %s671_s9 = smov %s504_s10 }
 0x25f   : > { %p12_p5 = scmp.ge.s32.totalorder %s15_s14, 4   ;;  %s672_s10 = smov %s508_s11 }
 0x260   : > { %s673_s11 = smov %s593_s22  ;;  %s674_s12 = smov %s516_s13 }
 0x261   : > { %s675_s13 = smov %s677_s17  ;;  %14 = sbr.rel (!%p12_p5) target bundleno = 4 (0x4), region = 74 }
 0x268   :  { %300 = vsyncpa [#allocation5], 1 }
 0x269   :  { %302 = vsyncpa [#allocation5 + $0x1], 1 }

</bundles_post_ra>
